<compile_context>
chip_gen: v7x
topology: tpu7x:2x2x1
jax: 0.10.0
libtpu: 0.0.40
codegen_flags: <defaults>
</compile_context>

<pallas_src>
import functools

import jax
import jax.numpy as jnp
from jax.experimental import pallas as pl
from jax.experimental.pallas import tpu as pltpu


# ----------------------------- Pallas kernel -------------------------------

def fp_mlp_kernel(lhs_ref, w1_ref, b1_ref, w2_ref, b2_ref, out_ref):
    # One merged W1 contraction over [interp | skip_x | skip_pos | 0-pad]  (MXU, bf16
    # in / f32 accumulation), then ReLU -> W2 -> ReLU, fully fused in VMEM.
    h = jnp.dot(lhs_ref[...], w1_ref[...], preferred_element_type=jnp.float32)
    h = jnp.maximum(h + b1_ref[...], 0.0)                          # Lin + ReLU
    h = jnp.dot(h.astype(jnp.bfloat16), w2_ref[...],
                preferred_element_type=jnp.float32)
    out_ref[...] = jnp.maximum(h + b2_ref[...], 0.0).astype(out_ref.dtype)  # Lin + ReLU


def fp_mlp_pallas(lhs, w1, b1, w2, b2, *, tm=256, out_dtype=jnp.bfloat16):
    M, D = lhs.shape
    H = w1.shape[1]
    Cout = w2.shape[1]
    assert M % tm == 0, "pad M to a multiple of tm before calling"
    return pl.pallas_call(
        fp_mlp_kernel,
        out_shape=jax.ShapeDtypeStruct((M, Cout), out_dtype),
        grid=(M // tm,),
        in_specs=[
            pl.BlockSpec((tm, D), lambda i: (i, 0)),     # fused [interp|skip_x|skip_pos] slab (bf16)
            pl.BlockSpec((D, H), lambda i: (0, 0)),      # merged W1 (bf16)
            pl.BlockSpec((1, H), lambda i: (0, 0)),      # b1 (f32)
            pl.BlockSpec((H, Cout), lambda i: (0, 0)),   # W2 (bf16)
            pl.BlockSpec((1, Cout), lambda i: (0, 0)),   # b2 (f32)
        ],
        out_specs=pl.BlockSpec((tm, Cout), lambda i: (i, 0)),
        compiler_params=pltpu.CompilerParams(dimension_semantics=("parallel",)),
    )(lhs, w1, b1, w2, b2)


# ------------------------------ JAX glue ops --------------------------------

def knn_with_dist(in_pos_g, skip_pos_g, k):
    """k nearest in-layer points for each skip point (one graph): indices + squared dists."""
    d2 = jnp.sum((skip_pos_g[:, None, :] - in_pos_g[None, :, :]) ** 2, axis=-1)  # [S, N_in]
    neg_top, idx = jax.lax.top_k(-d2, k)
    return idx.astype(jnp.int32), -neg_top


def pointnet2_fp_module(in_layer, skip_layer, mlp_params, *, B, n_in, n_skip, k,
                        tm=256, out_dtype=jnp.bfloat16):
    """Forward of PointNet2FPModule. Assumes B equal-size graphs."""
    in_x, in_pos, _in_batch = in_layer
    skip_x, skip_pos, skip_batch = skip_layer
    w1, b1, w2, b2 = mlp_params            # Lin(Cin+Cskip+3, H), Lin(H, Cout)

    Cin = in_x.shape[1]
    Cskip = skip_x.shape[1]
    D = Cin + Cskip + 3
    assert w1.shape[0] == D

    # knn per graph (squared distances reused for the weights), lifted to global indices.
    in_pos_b = in_pos.reshape(B, n_in, 3)
    skip_pos_b = skip_pos.reshape(B, n_skip, 3)
    nb_l, d2 = jax.vmap(functools.partial(knn_with_dist, k=k))(in_pos_b, skip_pos_b)
    nb = (nb_l + (jnp.arange(B, dtype=jnp.int32) * n_in)[:, None, None]).reshape(-1, k)
    d2 = d2.reshape(-1, k)

    # Inverse-distance weights (PointConvFP.message): 1/max(dist,1e-10) == rsqrt(max(d2,1e-20)).
    w = jax.lax.rsqrt(jnp.maximum(d2, 1e-20))
    w = w / (jnp.sum(w, axis=1, keepdims=True) + 1e-16)

    # Gather + 'add' aggregation + concat, all fused by XLA into one (M, D) bf16 slab --
    # the only materialized intermediate of the interpolation.
    interp = jnp.einsum('mk,mkc->mc', w, in_x[nb])      # (M, Cin)

    M = B * n_skip
    D_pad = ((D + 7) // 8) * 8
    m_pad = pl.cdiv(M, tm) * tm
    lhs = jnp.concatenate(
        [interp, skip_x, skip_pos, jnp.zeros((M, D_pad - D), jnp.float32)],
        axis=1).astype(jnp.bfloat16)
    if m_pad != M:
        lhs = jnp.pad(lhs, ((0, m_pad - M), (0, 0)))    # zero rows -> finite garbage, sliced off

    # Merged W1: rows stacked in concat order, zero-padded; bf16 MXU operands.
    w1_pack = jnp.concatenate(
        [w1, jnp.zeros((D_pad - D, w1.shape[1]), w1.dtype)], axis=0).astype(jnp.bfloat16)
    x1 = fp_mlp_pallas(lhs, w1_pack, b1.reshape(1, -1),
                       w2.astype(jnp.bfloat16), b2.reshape(1, -1),
                       tm=tm, out_dtype=out_dtype)[:M]
    return x1, skip_pos, skip_batch


# --------------------------------- main --------------------------------------

if __name__ == "__main__":
    B = 2
    N_IN, N_SKIP = 64, 512            # coarse / dense points per graph
    C_IN, C_SKIP = 64, 64
    K_NN = 3
    H, C_OUT = 128, 128
    TM = 256                          # grid = B*N_SKIP/TM = 4 steps (>=2 per TC on v7x)

    key = jax.random.PRNGKey(0)
    ks = jax.random.split(key, 8)

    in_pos = jax.random.uniform(ks[0], (B * N_IN, 3), jnp.float32)
    in_x = jax.random.normal(ks[1], (B * N_IN, C_IN), jnp.float32)
    in_batch = jnp.repeat(jnp.arange(B, dtype=jnp.int32), N_IN)

    skip_pos = jax.random.uniform(ks[2], (B * N_SKIP, 3), jnp.float32)
    skip_x = jax.random.normal(ks[3], (B * N_SKIP, C_SKIP), jnp.float32)
    skip_batch = jnp.repeat(jnp.arange(B, dtype=jnp.int32), N_SKIP)

    # mlp = Seq(Lin(C_IN + C_SKIP + 3, H), ReLU, Lin(H, C_OUT), ReLU)  (BatchNorm == Identity)
    D_IN = C_IN + C_SKIP + 3
    w1 = jax.random.normal(ks[4], (D_IN, H), jnp.float32) * 0.05
    b1 = jax.random.normal(ks[5], (H,), jnp.float32) * 0.01
    w2 = jax.random.normal(ks[6], (H, C_OUT), jnp.float32) * 0.05
    b2 = jax.random.normal(ks[7], (C_OUT,), jnp.float32) * 0.01
    params = (w1, b1, w2, b2)

    x1, pos1, batch1 = pointnet2_fp_module(
        (in_x, in_pos, in_batch), (skip_x, skip_pos, skip_batch), params,
        B=B, n_in=N_IN, n_skip=N_SKIP, k=K_NN, tm=TM)
    jax.block_until_ready((x1, pos1, batch1))

    assert x1.shape == (B * N_SKIP, C_OUT)
    assert pos1.shape == (B * N_SKIP, 3)
    assert batch1.shape == (B * N_SKIP,)

    # Pure-JAX f32 reference of the same forward (bf16 slab/weights/out => loose tol).
    def reference():
        in_pos_b = in_pos.reshape(B, N_IN, 3)
        skip_pos_b = skip_pos.reshape(B, N_SKIP, 3)
        nb_l, _ = jax.vmap(functools.partial(knn_with_dist, k=K_NN))(in_pos_b, skip_pos_b)
        nb = (nb_l + (jnp.arange(B, dtype=jnp.int32) * N_IN)[:, None, None]).reshape(-1, K_NN)
        d = jnp.sqrt(jnp.sum((in_pos[nb] - skip_pos[:, None, :]) ** 2, axis=-1))
        wgt = 1.0 / jnp.maximum(d, 1e-10)
        wgt = wgt / (jnp.sum(wgt, axis=1, keepdims=True) + 1e-16)
        interp = jnp.sum(wgt[:, :, None] * in_x[nb], axis=1)
        feat = jnp.concatenate([interp, skip_x, skip_pos], axis=1)
        h = jnp.maximum(feat @ w1 + b1, 0.0)
        return jnp.maximum(h @ w2 + b2, 0.0)

    err = float(jnp.max(jnp.abs(x1.astype(jnp.float32) - reference())))
    assert err < 0.1, f"max abs err {err}"
    print("KERNEL_OK")
</pallas_src>

<mosaic_0001>
module attributes {stable_mosaic.version = 11 : i64} {
  func.func @fp_mlp_kernel(%arg0: i32, %arg1: memref<256x136xbf16, #tpu.memory_space<vmem>>, %arg2: memref<136x128xbf16, #tpu.memory_space<vmem>>, %arg3: memref<1x128xf32, #tpu.memory_space<vmem>>, %arg4: memref<128x128xbf16, #tpu.memory_space<vmem>>, %arg5: memref<1x128xf32, #tpu.memory_space<vmem>>, %arg6: memref<256x128xbf16, #tpu.memory_space<vmem>>) attributes {dimension_semantics = [#tpu.dimension_semantics<parallel>], iteration_bounds = array<i64: 4>, scalar_prefetch = 0 : i64, scratch_operands = 0 : i64, tpu.core_type = #tpu.core_type<tc>, window_params = [{transform_indices = @transform_0, window_bounds = array<i64: 256, 136>}, {pipeline_mode = #tpu.pipeline_mode<synchronous>, transform_indices = @transform_1, window_bounds = array<i64: 136, 128>}, {pipeline_mode = #tpu.pipeline_mode<synchronous>, transform_indices = @transform_2, window_bounds = array<i64: 1, 128>}, {pipeline_mode = #tpu.pipeline_mode<synchronous>, transform_indices = @transform_3, window_bounds = array<i64: 128, 128>}, {pipeline_mode = #tpu.pipeline_mode<synchronous>, transform_indices = @transform_4, window_bounds = array<i64: 1, 128>}, {transform_indices = @transform_5, window_bounds = array<i64: 256, 128>}]} {
    %c0 = arith.constant 0 : index
    %c0_0 = arith.constant 0 : index
    %0 = vector.load %arg1[%c0, %c0_0] : memref<256x136xbf16, #tpu.memory_space<vmem>>, vector<256x136xbf16>
    %c0_1 = arith.constant 0 : index
    %c0_2 = arith.constant 0 : index
    %1 = vector.load %arg2[%c0_1, %c0_2] : memref<136x128xbf16, #tpu.memory_space<vmem>>, vector<136x128xbf16>
    %cst = arith.constant dense<0.000000e+00> : vector<256x128xf32>
    %2 = tpu.matmul %0, %1, %cst {dimension_numbers = #tpu.dot_dimension_numbers<[1], [0], [0], [1], [0, 0, 1, 1], [], []>} : vector<256x136xbf16>, vector<136x128xbf16>, vector<256x128xf32> -> vector<256x128xf32>
    %c0_3 = arith.constant 0 : index
    %c0_4 = arith.constant 0 : index
    %3 = vector.load %arg3[%c0_3, %c0_4] : memref<1x128xf32, #tpu.memory_space<vmem>>, vector<1x128xf32>
    %4 = vector.broadcast %3 : vector<1x128xf32> to vector<256x128xf32>
    %5 = arith.addf %2, %4 : vector<256x128xf32>
    %cst_5 = arith.constant 0.000000e+00 : f32
    %6 = vector.broadcast %cst_5 : f32 to vector<256x128xf32>
    %7 = arith.maximumf %5, %6 : vector<256x128xf32>
    %8 = arith.truncf %7 : vector<256x128xf32> to vector<256x128xbf16>
    %c0_6 = arith.constant 0 : index
    %c0_7 = arith.constant 0 : index
    %9 = vector.load %arg4[%c0_6, %c0_7] : memref<128x128xbf16, #tpu.memory_space<vmem>>, vector<128x128xbf16>
    %cst_8 = arith.constant dense<0.000000e+00> : vector<256x128xf32>
    %10 = tpu.matmul %8, %9, %cst_8 {dimension_numbers = #tpu.dot_dimension_numbers<[1], [0], [0], [1], [0, 0, 1, 1], [], []>} : vector<256x128xbf16>, vector<128x128xbf16>, vector<256x128xf32> -> vector<256x128xf32>
    %c0_9 = arith.constant 0 : index
    %c0_10 = arith.constant 0 : index
    %11 = vector.load %arg5[%c0_9, %c0_10] : memref<1x128xf32, #tpu.memory_space<vmem>>, vector<1x128xf32>
    %12 = vector.broadcast %11 : vector<1x128xf32> to vector<256x128xf32>
    %13 = arith.addf %10, %12 : vector<256x128xf32>
    %cst_11 = arith.constant 0.000000e+00 : f32
    %14 = vector.broadcast %cst_11 : f32 to vector<256x128xf32>
    %15 = arith.maximumf %13, %14 : vector<256x128xf32>
    %16 = arith.truncf %15 : vector<256x128xf32> to vector<256x128xbf16>
    %c0_12 = arith.constant 0 : index
    %c0_13 = arith.constant 0 : index
    %17 = vector.load %arg6[%c0_12, %c0_13] : memref<256x128xbf16, #tpu.memory_space<vmem>>, vector<256x128xbf16>
    tpu.vector_store %arg6[%c0_12, %c0_13], %16 {strides = array<i32>} : memref<256x128xbf16, #tpu.memory_space<vmem>>, vector<256x128xbf16>,
    return
  }
  func.func @transform_0(%arg0: i32) -> (i32, i32) {
    %c0_i32 = arith.constant 0 : i32
    %c0_i32_0 = arith.constant 0 : i32
    return %arg0, %c0_i32 : i32, i32
  }
  func.func @transform_1(%arg0: i32) -> (i32, i32) {
    %c0_i32 = arith.constant 0 : i32
    %c0_i32_0 = arith.constant 0 : i32
    %c0_i32_1 = arith.constant 0 : i32
    return %c0_i32, %c0_i32_0 : i32, i32
  }
  func.func @transform_2(%arg0: i32) -> (i32, i32) {
    %c0_i32 = arith.constant 0 : i32
    %c0_i32_0 = arith.constant 0 : i32
    %c0_i32_1 = arith.constant 0 : i32
    return %c0_i32, %c0_i32_0 : i32, i32
  }
  func.func @transform_3(%arg0: i32) -> (i32, i32) {
    %c0_i32 = arith.constant 0 : i32
    %c0_i32_0 = arith.constant 0 : i32
    %c0_i32_1 = arith.constant 0 : i32
    return %c0_i32, %c0_i32_0 : i32, i32
  }
  func.func @transform_4(%arg0: i32) -> (i32, i32) {
    %c0_i32 = arith.constant 0 : i32
    %c0_i32_0 = arith.constant 0 : i32
    %c0_i32_1 = arith.constant 0 : i32
    return %c0_i32, %c0_i32_0 : i32, i32
  }
  func.func @transform_5(%arg0: i32) -> (i32, i32) {
    %c0_i32 = arith.constant 0 : i32
    %c0_i32_0 = arith.constant 0 : i32
    return %arg0, %c0_i32 : i32, i32
  }
}

</mosaic_0001>

<bundles_post_ra>
// kernel: tpu_custom_call.1
= control target key start
LH: loop header
LB: loop body
LE: loop exit
PB: predicated region body
PF: predicated region fallthrough
CT: control target
= control target key end

     0   :  { %10 = vsyncpa [#allocation3], 0  ;;  %s2091_s0 = inlined_call_operand.vmem [shape: bf16[1024,136], index: 0, kind: input, shape index: {}]   ;;  %s2092_s1 = inlined_call_operand.vmem [shape: bf16[136,128], index: 1, kind: input, shape index: {}]   ;;  %s2093_s2 = inlined_call_operand.vmem [shape: f32[1,128], index: 2, kind: input, shape index: {}]   ;;  %s2094_s3 = inlined_call_operand.vmem [shape: bf16[128,128], index: 3, kind: input, shape index: {}]   ;;  %s2095_s4 = inlined_call_operand.vmem [shape: f32[1,128], index: 4, kind: input, shape index: {}]   ;;  %s2096_s5 = inlined_call_operand.hbm [shape: bf16[1024,128], index: 5, kind: output, shape index: {}]  }
   0x1   :  { %12 = vsyncpa [#allocation3 + $0x1], 0  ;;  %s1779_s18 = smov 0   ;;  %s1781_s19 = smov 0  }
   0x2   :  { %s1783_s20 = smov 0   ;;  %s1785_s21 = smov 0  }
   0x3 LB: > { %s1800_s22 = sadd.s32 4294967295, %s1743_s21   ;;  %s1243_s23 = sadd.s32 4294967294, %s1743_s21   ;;  %s1743_s21 = sphi %s1785_s21, %s2102_s21   ;;  %s1739_s20 = sphi %s1783_s20, %s2101_s20   ;;  %s1735_s19 = sphi %s1781_s19, %s2100_s19   ;;  %s1731_s18 = sphi %s1779_s18, %s2099_s18  }
   0x4   : > { %s1804_s24 = sadd.s32 1, %s1743_s21   ;;  %s135_s25 = sadd.s32 1, %s1739_s20 }
   0x5   : > { %s132_s26 = ssub.s32 %s1743_s21, %s1804_s24  ;;  %p145_p0 = scmp.ne.s32.totalorder %s1739_s20, %s1735_s19 }
   0x6   : > { %p133_p1 = scmp.eq.s32.totalorder %s132_s26, 0  ;;  %p146_p2 = scmp.eq.s32.totalorder %s1800_s22, 3 }
   0x7   : > { %p151_p3 = scmp.ne.s32.totalorder %s1735_s19, %s1731_s18  ;;  %p152_p4 = scmp.eq.s32.totalorder %s1243_s23, 3 }
   0x8   : > { %s1815_s27 = scalar_select %p133_p1, %s1739_s20, %s135_s25  }
   0x9   : > { %p1817_p5 = por %p146_p2, %p145_p0  ;;  %p1821_p6 = por %p152_p4, %p151_p3 }
   0xa   : > { %p1246_p7 = scmp.ge.s32.totalorder %s1743_s21, 1  ;;  %p192_p8 = scmp.lt.s32.totalorder %s1743_s21, 5 }
   0xc   : > { %p193_p9 = pnand %p1246_p7, %p192_p8 }
   0xd   : > { %v1616_v0 = vld [vmem:[%s2092_s1] sm:$0xff] (!%p193_p9)   ;;  %v1745_v1 = vmov (!%p193_p9), 0   ;;  %v1617_v2 = vld [vmem:[%s2092_s1 + $0x8] sm:$0xff] (!%p193_p9)   ;;  %s1248_s9 = sshll.u32 (!%p193_p9), %s1800_s22, 5  ;;  %v1618_v3 = vld [vmem:[%s2092_s1 + $0x10] sm:$0xff] (!%p193_p9)   ;;  %vm481_vm0 = vcmask (!%p193_p9), 64512  }
   0xe   : > { %196 = sbr.rel (%p193_p9) target bundleno = 610 (0x262), region = 40  ;;  %534 = vmatprep.subr.bf16.mxu0 (!%p193_p9), %v1745_v1  ;;  %1556 = vmatprep.subr.bf16.mxu1 (!%p193_p9), %v1745_v1  ;;  %p222_p10 = scmp.lt.s32.totalorder (!%p193_p9), %s1248_s9, 127  ;;  %v1619_v4 = vld [vmem:[%s2092_s1 + $0x18] sm:$0xff] (!%p193_p9)   ;;  %v1620_v6 = vld [vmem:[%s2092_s1 + $0x20] sm:$0xff] (!%p193_p9)   ;;  %v1621_v7 = vld [vmem:[%s2092_s1 + $0x28] sm:$0xff] (!%p193_p9)   ;;  %vm530_vm1 = vcmask (!%p193_p9), 1043456  }
   0xf   : > { %535 = vmatpush1.bf16.msra.mxu0 (!%p193_p9), %v1616_v0  ;;  %1565 = vmatpush1.bf16.msra.mxu1 (!%p193_p9), %v1616_v0  ;;  %v1622_v8 = vld [vmem:[%s2092_s1 + $0x30] sm:$0xff] (!%p193_p9)   ;;  %v1623_v10 = vld [vmem:[%s2092_s1 + $0x38] sm:$0xff] (!%p193_p9)   ;;  %v1624_v11 = vld [vmem:[%s2092_s1 + $0x40] ss:$0 sps:$4 sm:$0xff] (!%p193_p9)   ;;  %s218_s17 = sand.u32 (!%p193_p9), 1, %s1735_s19   ;;  %s1388_s26 = sshll.u32 (!%p193_p9), %s1800_s22, 11 }
  0x10   : > { %536 = vmatprep.subr.bf16.mxu0 (!%p193_p9), %v1745_v1  ;;  %1557 = vmatprep.subr.bf16.mxu1 (!%p193_p9), %v1745_v1  ;;  %v532_v12 = vsel (!%p193_p9), %vm530_vm1, %v1624_v11, 0  ;;  %v1673_v14 = vld [vmem:[%s2094_s3] sm:$0xff] (!%p193_p9)   ;;  %v1674_v18 = vld [vmem:[%s2094_s3 + $0x8] sm:$0xff] (!%p193_p9)   ;;  %v1675_v19 = vld [vmem:[%s2094_s3 + $0x10] sm:$0xff] (!%p193_p9)   ;;  %s1247_s23 = sshll.u32 (!%p193_p9), %s218_s17, 7  ;;  %s2042_s8 = scalar_lea.hbm (!%p193_p9), %s2096_s5, %s1388_s26 }
  0x11   : > { %v1676_v24 = vld [vmem:[%s2094_s3 + $0x18] sm:$0xff] (!%p193_p9)   ;;  %v1677_v46 = vld [vmem:[%s2094_s3 + $0x20] sm:$0xff] (!%p193_p9)   ;;  %v1678_v48 = vld [vmem:[%s2094_s3 + $0x28] sm:$0xff] (!%p193_p9)   ;;  %s1993_s25 = scalar_lea.vmem (!%p193_p9), [#allocation2], %s1247_s23  ;;  %s2050_s22 = scalar_lea.sflag (!%p193_p9), [#allocation3], %s218_s17 }
  0x12   : > { %v1679_v49 = vld [vmem:[%s2094_s3 + $0x30] sm:$0xff] (!%p193_p9)   ;;  %v1680_v50 = vld [vmem:[%s2094_s3 + $0x38] sm:$0xff] (!%p193_p9)   ;;  %v1935_v51 = vld [vmem:[%s2093_s2] ss:$0 sm:$0xff] (!%p193_p9)  ;;  %s1181_s30 = sshll.u32 (!%p193_p9), %s1993_s25, 4  ;;  %s1746_s10 = smov (!%p193_p9), [#allocation2]   ;;  %s2044_s30 = int_to_ptr.vmem [resolvable:$true] %s1181_s30 }
  0x13   : > { %537 = vmatpush1.bf16.msra.mxu0 (!%p193_p9), %v1617_v2  ;;  %1566 = vmatpush1.bf16.msra.mxu1 (!%p193_p9), %v1617_v2  ;;  %s1685_s11 = sshll.u32 (!%p193_p9), %s1746_s10, 4  ;;  %s1686_s11 = int_to_ptr.vmem [resolvable:$false] %s1685_s11 }
  0x14   : > { %538 = vmatprep.subr.bf16.mxu0 (!%p193_p9), %v1745_v1  ;;  %1558 = vmatprep.subr.bf16.mxu1 (!%p193_p9), %v1745_v1  ;;  %p1688_p0 = scmp.lt.s32.totalorder (!%p193_p9), %s2044_s30, %s1686_s11 }
  0x15   : > { %s2104_s9 = smov (!%p222_p10, %s1248_s9), 127 }
  0x16   : > { %s1355_s12 = sshll.u32 %s2104_s9, 3  ;;  %s1681_s9 = scalar_lea.vmem %s2044_s30, 2048 }
  0x17   : > { %s1840_s15 = scalar_lea.vmem %s2091_s0, %s1355_s12  ;;  %539 = vmatpush1.bf16.msra.mxu0 %v1618_v3  ;;  %1567 = vmatpush1.bf16.msra.mxu1 %v1618_v3  ;;  %p1682_p11 = scmp.ne.s32.totalorder %s2044_s30, %s1681_s9 }
  0x18   : > { %v1627_v5 = vld [vmem:[%s1840_s15 + $0x4] ss:$8 sps:$4 sm:$0xff]   ;;  %540 = vmatprep.subr.bf16.mxu0 %v1745_v1  ;;  %1559 = vmatprep.subr.bf16.mxu1 %v1745_v1  ;;  %v1625_v13 = vld [vmem:[%s1840_s15] ss:$8 sps:$4 sm:$0xff]   ;;  %v1628_v15 = vld [vmem:[%s1840_s15 + $0x14] ss:$8 sps:$4 sm:$0xff]  }
  0x19   : > { %1293 = vmatprep.mubr.msk.bf16.mxu0 %vm481_vm0, %v1627_v5  ;;  %v1657_v9 = vld [vmem:[%s1840_s15 + $0xc4] ss:$8 sps:$4 sm:$0xff]   ;;  %v1655_v16 = vld [vmem:[%s1840_s15 + $0xc0] ss:$8 sps:$4 sm:$0xff]   ;;  %v1661_v17 = vld [vmem:[%s1840_s15 + $0xd4] ss:$8 sps:$4 sm:$0xff]   ;;  %p1683_p12 = pnand %p1682_p11, %p1817_p5 }
  0x1a   : > { %1305 = vmatprep.mubr.msk.bf16.mxu1 %vm481_vm0, %v1657_v9  ;;  %v1630_v20 = vld [vmem:[%s1840_s15 + $0x10] ss:$8 sps:$4 sm:$0xff]   ;;  %v1631_v22 = vld [vmem:[%s1840_s15 + $0x24] ss:$8 sps:$4 sm:$0xff]   ;;  %v1633_v25 = vld [vmem:[%s1840_s15 + $0x20] ss:$8 sps:$4 sm:$0xff]  }
  0x1b   : > { %541 = vmatpush1.bf16.msra.mxu0 %v1619_v4  ;;  %1568 = vmatpush1.bf16.msra.mxu1 %v1619_v4  ;;  %v1663_v21 = vld [vmem:[%s1840_s15 + $0xd0] ss:$8 sps:$4 sm:$0xff]   ;;  %v1667_v23 = vld [vmem:[%s1840_s15 + $0xe4] ss:$8 sps:$4 sm:$0xff]   ;;  %v1669_v26 = vld [vmem:[%s1840_s15 + $0xe0] ss:$8 sps:$4 sm:$0xff]   ;;  %p1684_p13 = pneg %p1683_p12 }
  0x1c   : > { %542 = vmatprep.subr.bf16.mxu0 %v1745_v1  ;;  %1560 = vmatprep.subr.bf16.mxu1 %v1745_v1  ;;  %v1634_v27 = vld [vmem:[%s1840_s15 + $0x34] ss:$8 sps:$4 sm:$0xff]   ;;  %v1636_v29 = vld [vmem:[%s1840_s15 + $0x30] ss:$8 sps:$4 sm:$0xff]   ;;  %v1637_v31 = vld [vmem:[%s1840_s15 + $0x44] ss:$8 sps:$4 sm:$0xff]  }
  0x1d   : > { %v1670_v28 = vld [vmem:[%s1840_s15 + $0xf4] ss:$8 sps:$4 sm:$0xff]   ;;  %v1672_v30 = vld [vmem:[%s1840_s15 + $0xf0] ss:$8 sps:$4 sm:$0xff]   ;;  %v1639_v32 = vld [vmem:[%s1840_s15 + $0x40] ss:$8 sps:$4 sm:$0xff]  }
  0x1e   : > { %v1640_v33 = vld [vmem:[%s1840_s15 + $0x54] ss:$8 sps:$4 sm:$0xff]   ;;  %v1642_v34 = vld [vmem:[%s1840_s15 + $0x50] ss:$8 sps:$4 sm:$0xff]   ;;  %v1643_v35 = vld [vmem:[%s1840_s15 + $0x64] ss:$8 sps:$4 sm:$0xff]  }
  0x1f   : > { %543 = vmatpush1.bf16.msra.mxu0 %v1620_v6  ;;  %1569 = vmatpush1.bf16.msra.mxu1 %v1620_v6  ;;  %v1645_v36 = vld [vmem:[%s1840_s15 + $0x60] ss:$8 sps:$4 sm:$0xff]   ;;  %v1646_v37 = vld [vmem:[%s1840_s15 + $0x74] ss:$8 sps:$4 sm:$0xff]   ;;  %v1648_v38 = vld [vmem:[%s1840_s15 + $0x70] ss:$8 sps:$4 sm:$0xff]  }
  0x20   : > { %544 = vmatprep.subr.bf16.mxu0 %v1745_v1  ;;  %1561 = vmatprep.subr.bf16.mxu1 %v1745_v1  ;;  %v1649_v39 = vld [vmem:[%s1840_s15 + $0x84] ss:$8 sps:$4 sm:$0xff]   ;;  %v1651_v40 = vld [vmem:[%s1840_s15 + $0x80] ss:$8 sps:$4 sm:$0xff]   ;;  %v1652_v41 = vld [vmem:[%s1840_s15 + $0x94] ss:$8 sps:$4 sm:$0xff]  }
  0x21   : > { %v1654_v42 = vld [vmem:[%s1840_s15 + $0x90] ss:$8 sps:$4 sm:$0xff]   ;;  %v1658_v43 = vld [vmem:[%s1840_s15 + $0xa4] ss:$8 sps:$4 sm:$0xff]   ;;  %v1660_v44 = vld [vmem:[%s1840_s15 + $0xa0] ss:$8 sps:$4 sm:$0xff]  }
  0x22   : > { %v1664_v45 = vld [vmem:[%s1840_s15 + $0xb4] ss:$8 sps:$4 sm:$0xff]   ;;  %v1666_v47 = vld [vmem:[%s1840_s15 + $0xb0] ss:$8 sps:$4 sm:$0xff]   ;;  %s1687_s12 = scalar_lea.vmem %s1686_s11, 4096 }
  0x23   : > { %545 = vmatpush1.bf16.msra.mxu0 %v1621_v7  ;;  %1570 = vmatpush1.bf16.msra.mxu1 %v1621_v7  ;;  %p1689_p1 = scmp.lt.s32.totalorder %s1687_s12, %s1681_s9 }
  0x24   : > { %546 = vmatprep.subr.bf16.mxu0 %v1745_v1  ;;  %1562 = vmatprep.subr.bf16.mxu1 %v1745_v1 }
  0x25   : > { %p1690_p2 = por %p1689_p1, %p1688_p0 }
  0x27   : > { %547 = vmatpush1.bf16.msra.mxu0 %v1622_v8  ;;  %1571 = vmatpush1.bf16.msra.mxu1 %v1622_v8  ;;  %p1691_p3 = pnand %p1690_p2, %p1684_p13 }
  0x28   : > { %548 = vmatprep.subr.bf16.mxu0 %v1745_v1  ;;  %1563 = vmatprep.subr.bf16.mxu1 %v1745_v1 }
  0x2b   : > { %549 = vmatpush1.bf16.msra.mxu0 %v1623_v10  ;;  %1572 = vmatpush1.bf16.msra.mxu1 %v1623_v10 }
  0x2c   : > { %550 = vmatprep.subr.bf16.mxu0 %v1745_v1  ;;  %1564 = vmatprep.subr.bf16.mxu1 %v1745_v1 }
  0x2f   : > { %551 = vmatpush1.bf16.msra.mxu0 %v532_v12  ;;  %1573 = vmatpush1.bf16.msra.mxu1 %v532_v12 }
  0x30   : > { %1508 = vmatprep.subr.bf16.mxu1 %v1673_v14 }
  0x32   : > { %567 = vmatmul.mubr.bf16.vlgmr.msra.gmra.mrb[0].mxu0 %v1625_v13  ;;  %663 = vmatmul.mubr.bf16.vlgmr.msra.gmra.mrb[0].mxu1 %v1655_v16 }
  0x33   : > { %1294 = vmatprep.mubr.msk.bf16.mxu0 %vm481_vm0, %v1628_v15  ;;  %1306 = vmatprep.mubr.msk.bf16.mxu1 %vm481_vm0, %v1661_v17 }
  0x34   : > { %1509 = vmatpush3.bf16.msra.mxu1 %v1673_v14 }
  0x35   : > { %1510 = vmatprep.subr.bf16.mxu1 %v1674_v18 }
  0x38   : > { %1511 = vmatpush3.bf16.msra.mxu1 %v1674_v18 }
  0x39   : > { %1512 = vmatprep.subr.bf16.mxu1 %v1675_v19 }
  0x3a   : > { %575 = vmatmul.mubr.bf16.gmra.mrb[4].mxu0 %v1630_v20  ;;  %671 = vmatmul.mubr.bf16.gmra.mrb[4].mxu1 %v1663_v21 }
  0x3b   : > { %1295 = vmatprep.mubr.msk.bf16.mxu0 %vm481_vm0, %v1631_v22  ;;  %1307 = vmatprep.mubr.msk.bf16.mxu1 %vm481_vm0, %v1667_v23 }
  0x3c   : > { %1513 = vmatpush3.bf16.msra.mxu1 %v1675_v19 }
  0x3d   : > { %1514 = vmatprep.subr.bf16.mxu1 %v1676_v24 }
  0x40   : > { %1515 = vmatpush3.bf16.msra.mxu1 %v1676_v24 }
  0x41   : > { %1516 = vmatprep.subr.bf16.mxu1 %v1677_v46 }
  0x42   : > { %583 = vmatmul.mubr.bf16.gmra.mrb[8].mxu0 %v1633_v25  ;;  %679 = vmatmul.mubr.bf16.gmra.mrb[8].mxu1 %v1669_v26 }
  0x43   : > { %1296 = vmatprep.mubr.msk.bf16.mxu0 %vm481_vm0, %v1634_v27  ;;  %1308 = vmatprep.mubr.msk.bf16.mxu1 %vm481_vm0, %v1670_v28 }
  0x44   : > { %1517 = vmatpush3.bf16.msra.mxu1 %v1677_v46 }
  0x45   : > { %1518 = vmatprep.subr.bf16.mxu1 %v1678_v48 }
  0x48   : > { %1519 = vmatpush3.bf16.msra.mxu1 %v1678_v48 }
  0x49   : > { %1520 = vmatprep.subr.bf16.mxu1 %v1679_v49 }
  0x4a   : > { %591 = vmatmul.mubr.bf16.gmra.mrb[12].mxu0 %v1636_v29  ;;  %687 = vmatmul.mubr.bf16.gmra.mrb[12].mxu1 %v1672_v30 }
  0x4b   : > { %1297 = vmatprep.mubr.msk.bf16.mxu0 %vm481_vm0, %v1637_v31 }
  0x4c   : > { %1521 = vmatpush3.bf16.msra.mxu1 %v1679_v49 }
  0x4d   : > { %1522 = vmatprep.subr.bf16.mxu1 %v1680_v50 }
  0x50   : > { %1523 = vmatpush3.bf16.msra.mxu1 %v1680_v50 }
  0x52   : > { %599 = vmatmul.mubr.bf16.gmra.mrb[16].mxu0 %v1639_v32 }
  0x53   : > { %1298 = vmatprep.mubr.msk.bf16.mxu0 %vm481_vm0, %v1640_v33 }
  0x5a   : > { %607 = vmatmul.mubr.bf16.gmra.mrb[20].mxu0 %v1642_v34 }
  0x5b   : > { %1299 = vmatprep.mubr.msk.bf16.mxu0 %vm481_vm0, %v1643_v35 }
  0x62   : > { %615 = vmatmul.mubr.bf16.gmra.mrb[24].mxu0 %v1645_v36 }
  0x63   : > { %1300 = vmatprep.mubr.msk.bf16.mxu0 %vm481_vm0, %v1646_v37 }
  0x6a   : > { %623 = vmatmul.mubr.bf16.gmra.mrb[28].mxu0 %v1648_v38 }
  0x6b   : > { %1301 = vmatprep.mubr.msk.bf16.mxu0 %vm481_vm0, %v1649_v39 }
  0x72   : > { %631 = vmatmul.mubr.bf16.gmra.mrb[32].mxu0 %v1651_v40 }
  0x73   : > { %1302 = vmatprep.mubr.msk.bf16.mxu0 %vm481_vm0, %v1652_v41 }
  0x7a   : > { %639 = vmatmul.mubr.bf16.gmra.mrb[36].mxu0 %v1654_v42 }
  0x7b   : > { %1303 = vmatprep.mubr.msk.bf16.mxu0 %vm481_vm0, %v1658_v43 }
  0x82   : > { %647 = vmatmul.mubr.bf16.gmra.mrb[40].mxu0 %v1660_v44 }
  0x83   : > { %1304 = vmatprep.mubr.msk.bf16.mxu0 %vm481_vm0, %v1664_v45 }
  0x8a   : > { %655 = vmatmul.mubr.bf16.gmra.mrb[44].mxu0 %v1666_v47 }
 0x105   : > { %v568_v52 = vpop.f32.mrb[0].mxu0  ;;  %v664_v53 = vpop.f32.mrb[0].mxu1 }
 0x106   : > { %v569_v54 = vadd.f32 %v1935_v51, %v568_v52  ;;  %v570_v55 = vpop.f32.mrb[1].mxu0  ;;  %v665_v56 = vadd.f32 %v1935_v51, %v664_v53  ;;  %v666_v57 = vpop.f32.mrb[1].mxu1 }
 0x107   : > { %v571_v58 = vpop.f32.mrb[2].mxu0  ;;  %v667_v59 = vpop.f32.mrb[2].mxu1 }
 0x108   : > { %v572_v60 = vadd.f32 %v1935_v51, %v571_v58  ;;  %v573_v61 = vpop.f32.mrb[3].mxu0  ;;  %v719_v62 = vmax.f32 %v665_v56, 0.0  ;;  %v668_v63 = vadd.f32 %v1935_v51, %v667_v59  ;;  %v669_v0 = vpop.f32.mrb[3].mxu1  ;;  %v695_v1 = vmax.f32 %v569_v54, 0.0 }
 0x10a   : > { %v696_v2 = vmax.f32 %v572_v60, 0.0  ;;  %v720_v3 = vmax.f32 %v668_v63, 0.0 }
 0x10c   : > { %v727_v4 = vpack.c.bf16 %v696_v2, %v695_v1  ;;  %v1941_v5 = vpack.c.bf16 %v720_v3, %v719_v62 }
 0x10d   : > { %v576_v6 = vpop.f32.mrb[4].mxu0  ;;  %v672_v7 = vpop.f32.mrb[4].mxu1 }
 0x10e   : > { %v577_v8 = vadd.f32 %v1935_v51, %v576_v6  ;;  %v578_v9 = vpop.f32.mrb[5].mxu0  ;;  %1524 = vmatprep.mubr.bf16.mxu1 %v727_v4  ;;  %v673_v10 = vadd.f32 %v1935_v51, %v672_v7  ;;  %v674_v11 = vpop.f32.mrb[5].mxu1 }
 0x10f   : > { %v579_v12 = vpop.f32.mrb[6].mxu0  ;;  %v675_v13 = vpop.f32.mrb[6].mxu1 }
 0x110   : > { %v580_v14 = vadd.f32 %v1935_v51, %v579_v12  ;;  %v581_v15 = vpop.f32.mrb[7].mxu0  ;;  %v721_v16 = vmax.f32 %v673_v10, 0.0  ;;  %v676_v17 = vadd.f32 %v1935_v51, %v675_v13  ;;  %v677_v18 = vpop.f32.mrb[7].mxu1  ;;  %v697_v19 = vmax.f32 %v577_v8, 0.0 }
 0x112   : > { %v698_v20 = vmax.f32 %v580_v14, 0.0  ;;  %v722_v21 = vmax.f32 %v676_v17, 0.0 }
 0x114   : > { %v728_v22 = vpack.c.bf16 %v698_v20, %v697_v19  ;;  %v1947_v23 = vpack.c.bf16 %v722_v21, %v721_v16 }
 0x115   : > { %v584_v24 = vpop.f32.mrb[8].mxu0  ;;  %v680_v25 = vpop.f32.mrb[8].mxu1 }
 0x116   : > { %v585_v26 = vadd.f32 %v1935_v51, %v584_v24  ;;  %v586_v27 = vpop.f32.mrb[9].mxu0  ;;  %1525 = vmatmul.mubr.bf16.vlgmr.msra.gmra.mrb[16].mxu1 %v728_v22  ;;  %v681_v28 = vadd.f32 %v1935_v51, %v680_v25  ;;  %v682_v29 = vpop.f32.mrb[9].mxu1 }
 0x117   : > { %v587_v30 = vpop.f32.mrb[10].mxu0  ;;  %v683_v31 = vpop.f32.mrb[10].mxu1 }
 0x118   : > { %v588_v32 = vadd.f32 %v1935_v51, %v587_v30  ;;  %v589_v33 = vpop.f32.mrb[11].mxu0  ;;  %v723_v34 = vmax.f32 %v681_v28, 0.0  ;;  %v684_v35 = vadd.f32 %v1935_v51, %v683_v31  ;;  %v685_v36 = vpop.f32.mrb[11].mxu1  ;;  %v699_v37 = vmax.f32 %v585_v26, 0.0 }
 0x11a   : > { %v700_v38 = vmax.f32 %v588_v32, 0.0  ;;  %v724_v39 = vmax.f32 %v684_v35, 0.0 }
 0x11c   : > { %v729_v40 = vpack.c.bf16 %v700_v38, %v699_v37  ;;  %v1953_v41 = vpack.c.bf16 %v724_v39, %v723_v34 }
 0x11d   : > { %v592_v42 = vpop.f32.mrb[12].mxu0  ;;  %v688_v43 = vpop.f32.mrb[12].mxu1 }
 0x11e   : > { %v593_v44 = vadd.f32 %v1935_v51, %v592_v42  ;;  %v594_v45 = vpop.f32.mrb[13].mxu0  ;;  %1528 = vmatprep.mubr.bf16.mxu1 %v729_v40  ;;  %v689_v46 = vadd.f32 %v1935_v51, %v688_v43  ;;  %v690_v47 = vpop.f32.mrb[13].mxu1 }
 0x11f   : > { %v595_v48 = vpop.f32.mrb[14].mxu0  ;;  %v691_v49 = vpop.f32.mrb[14].mxu1 }
 0x120   : > { %v596_v50 = vadd.f32 %v1935_v51, %v595_v48  ;;  %v597_v52 = vpop.f32.mrb[15].mxu0  ;;  %v725_v53 = vmax.f32 %v689_v46, 0.0  ;;  %v692_v54 = vadd.f32 %v1935_v51, %v691_v49  ;;  %v693_v55 = vpop.f32.mrb[15].mxu1  ;;  %v701_v56 = vmax.f32 %v593_v44, 0.0 }
 0x122   : > { %v702_v57 = vmax.f32 %v596_v50, 0.0  ;;  %v726_v58 = vmax.f32 %v692_v54, 0.0 }
 0x124   : > { %v730_v59 = vpack.c.bf16 %v702_v57, %v701_v56  ;;  %v1959_v60 = vpack.c.bf16 %v726_v58, %v725_v53 }
 0x125   : > { %v600_v61 = vpop.f32.mrb[16].mxu0 }
 0x126   : > { %v601_v62 = vadd.f32 %v1935_v51, %v600_v61  ;;  %v602_v63 = vpop.f32.mrb[17].mxu0  ;;  %1529 = vmatmul.mubr.bf16.gmra.mrb[20].mxu1 %v730_v59 }
 0x127   : > { %v603_v0 = vpop.f32.mrb[18].mxu0 }
 0x128   : > { %v604_v1 = vadd.f32 %v1935_v51, %v603_v0  ;;  %v605_v2 = vpop.f32.mrb[19].mxu0  ;;  %v703_v3 = vmax.f32 %v601_v62, 0.0 }
 0x12a   : > { %v704_v4 = vmax.f32 %v604_v1, 0.0 }
 0x12c   : > { %v731_v6 = vpack.c.bf16 %v704_v4, %v703_v3 }
 0x12d   : > { %v608_v7 = vpop.f32.mrb[20].mxu0 }
 0x12e   : > { %v609_v8 = vadd.f32 %v1935_v51, %v608_v7  ;;  %v610_v9 = vpop.f32.mrb[21].mxu0  ;;  %1532 = vmatprep.mubr.bf16.mxu1 %v731_v6 }
 0x12f   : > { %v611_v10 = vpop.f32.mrb[22].mxu0 }
 0x130   : > { %v612_v11 = vadd.f32 %v1935_v51, %v611_v10  ;;  %v613_v12 = vpop.f32.mrb[23].mxu0  ;;  %v705_v13 = vmax.f32 %v609_v8, 0.0 }
 0x132   : > { %v706_v14 = vmax.f32 %v612_v11, 0.0  ;;  %v1984_v11 = vld [vmem:[%s2095_s4] ss:$0 sm:$0xff] }
 0x134   : > { %v732_v15 = vpack.c.bf16 %v706_v14, %v705_v13 }
 0x135   : > { %v616_v16 = vpop.f32.mrb[24].mxu0 }
 0x136   : > { %v617_v17 = vadd.f32 %v1935_v51, %v616_v16  ;;  %v618_v18 = vpop.f32.mrb[25].mxu0  ;;  %1533 = vmatmul.mubr.bf16.gmra.mrb[24].mxu1 %v732_v15 }
 0x137   : > { %v619_v19 = vpop.f32.mrb[26].mxu0 }
 0x138   : > { %v620_v20 = vadd.f32 %v1935_v51, %v619_v19  ;;  %v621_v21 = vpop.f32.mrb[27].mxu0  ;;  %v707_v22 = vmax.f32 %v617_v17, 0.0 }
 0x13a   : > { %v708_v24 = vmax.f32 %v620_v20, 0.0 }
 0x13c   : > { %v733_v25 = vpack.c.bf16 %v708_v24, %v707_v22 }
 0x13d   : > { %v624_v26 = vpop.f32.mrb[28].mxu0 }
 0x13e   : > { %v625_v27 = vadd.f32 %v1935_v51, %v624_v26  ;;  %v626_v28 = vpop.f32.mrb[29].mxu0  ;;  %1536 = vmatprep.mubr.bf16.mxu1 %v733_v25 }
 0x13f   : > { %v627_v29 = vpop.f32.mrb[30].mxu0 }
 0x140   : > { %v628_v30 = vadd.f32 %v1935_v51, %v627_v29  ;;  %v629_v31 = vpop.f32.mrb[31].mxu0  ;;  %v709_v32 = vmax.f32 %v625_v27, 0.0 }
 0x142   : > { %v710_v33 = vmax.f32 %v628_v30, 0.0 }
 0x144   : > { %v734_v34 = vpack.c.bf16 %v710_v33, %v709_v32 }
 0x145   : > { %v632_v35 = vpop.f32.mrb[32].mxu0 }
 0x146   : > { %v633_v36 = vadd.f32 %v1935_v51, %v632_v35  ;;  %v634_v37 = vpop.f32.mrb[33].mxu0  ;;  %1537 = vmatmul.mubr.bf16.gmra.mrb[28].mxu1 %v734_v34 }
 0x147   : > { %v635_v38 = vpop.f32.mrb[34].mxu0 }
 0x148   : > { %v636_v39 = vadd.f32 %v1935_v51, %v635_v38  ;;  %v637_v40 = vpop.f32.mrb[35].mxu0  ;;  %v711_v42 = vmax.f32 %v633_v36, 0.0 }
 0x14a   : > { %v712_v43 = vmax.f32 %v636_v39, 0.0 }
 0x14c   : > { %v735_v44 = vpack.c.bf16 %v712_v43, %v711_v42 }
 0x14d   : > { %v640_v45 = vpop.f32.mrb[36].mxu0 }
 0x14e   : > { %v641_v46 = vadd.f32 %v1935_v51, %v640_v45  ;;  %v642_v47 = vpop.f32.mrb[37].mxu0  ;;  %1540 = vmatprep.mubr.bf16.mxu1 %v735_v44 }
 0x14f   : > { %v643_v48 = vpop.f32.mrb[38].mxu0 }
 0x150   : > { %v644_v49 = vadd.f32 %v1935_v51, %v643_v48  ;;  %v645_v50 = vpop.f32.mrb[39].mxu0  ;;  %v713_v52 = vmax.f32 %v641_v46, 0.0 }
 0x152   : > { %v714_v53 = vmax.f32 %v644_v49, 0.0 }
 0x154   : > { %v736_v54 = vpack.c.bf16 %v714_v53, %v713_v52 }
 0x155   : > { %v648_v55 = vpop.f32.mrb[40].mxu0 }
 0x156   : > { %v649_v56 = vadd.f32 %v1935_v51, %v648_v55  ;;  %v650_v57 = vpop.f32.mrb[41].mxu0  ;;  %1541 = vmatmul.mubr.bf16.gmra.mrb[32].mxu1 %v736_v54 }
 0x157   : > { %v651_v58 = vpop.f32.mrb[42].mxu0 }
 0x158   : > { %v652_v59 = vadd.f32 %v1935_v51, %v651_v58  ;;  %v653_v61 = vpop.f32.mrb[43].mxu0  ;;  %v715_v62 = vmax.f32 %v649_v56, 0.0 }
 0x15a   : > { %v716_v63 = vmax.f32 %v652_v59, 0.0 }
 0x15c   : > { %v737_v0 = vpack.c.bf16 %v716_v63, %v715_v62 }
 0x15d   : > { %v656_v1 = vpop.f32.mrb[44].mxu0 }
 0x15e   : > { %v657_v2 = vadd.f32 %v1935_v51, %v656_v1  ;;  %v658_v3 = vpop.f32.mrb[45].mxu0  ;;  %1544 = vmatprep.mubr.bf16.mxu1 %v737_v0 }
 0x15f   : > { %v659_v4 = vpop.f32.mrb[46].mxu0 }
 0x160   : > { %v660_v6 = vadd.f32 %v1935_v51, %v659_v4  ;;  %v661_v7 = vpop.f32.mrb[47].mxu0  ;;  %v717_v8 = vmax.f32 %v657_v2, 0.0 }
 0x162   : > { %v718_v9 = vmax.f32 %v660_v6, 0.0 }
 0x164   : > { %v738_v10 = vpack.c.bf16 %v718_v9, %v717_v8 }
 0x166   : > { %1545 = vmatmul.mubr.bf16.gmra.mrb[36].mxu1 %v738_v10 }
 0x167   : > { %1548 = vmatprep.mubr.bf16.mxu1 %v1941_v5 }
 0x16e   : > { %1549 = vmatmul.mubr.bf16.gmra.mrb[40].mxu1 %v1947_v23 }
 0x16f   : > { %1552 = vmatprep.mubr.bf16.mxu1 %v1953_v41 }
 0x176   : > { %1553 = vmatmul.mubr.bf16.gmra.mrb[44].mxu1 %v1959_v60 }
 0x1e9   : > { %v1526_v51 = vpop.f32.mrb[16].mxu1 }
 0x1ea   : > { %v857_v12 = vadd.f32 %v1526_v51, %v1984_v11  ;;  %v848_v13 = vpop.f32.mrb[17].mxu1 }
 0x1eb   : > { %v849_v14 = vadd.f32 %v1984_v11, %v848_v13  ;;  %v1527_v15 = vpop.f32.mrb[18].mxu1 }
 0x1ec   : > { %v860_v5 = vadd.f32 %v1527_v15, %v1984_v11  ;;  %v851_v23 = vpop.f32.mrb[19].mxu1  ;;  %v977_v60 = vmax.f32 %v857_v12, 0.0 }
 0x1ed   : > { %v852_v41 = vadd.f32 %v1984_v11, %v851_v23  ;;  %v975_v17 = vmax.f32 %v849_v14, 0.0 }
 0x1ee   : > { %v978_v16 = vmax.f32 %v860_v5, 0.0 }
 0x1ef   : > { %v976_v18 = vmax.f32 %v852_v41, 0.0 }
 0x1f0   : > { %v1397_v19 = vpack.c.bf16 %v978_v16, %v977_v60 }
 0x1f1   : > { %v1392_v20 = vpack.c.bf16 %v976_v18, %v975_v17 }
 0x1f2   : > { %1469 = vst [vmem:[%s1993_s25 + $0x8] sm:$0xff] %v1397_v19  }
 0x1f3   : > { %1393 = vst [vmem:[%s1993_s25] sm:$0xff] %v1392_v20  }
 0x1f9   : > { %v1530_v21 = vpop.f32.mrb[20].mxu1 }
 0x1fa   : > { %v873_v22 = vadd.f32 %v1530_v21, %v1984_v11  ;;  %v864_v24 = vpop.f32.mrb[21].mxu1 }
 0x1fb   : > { %v865_v25 = vadd.f32 %v1984_v11, %v864_v24  ;;  %v1531_v26 = vpop.f32.mrb[22].mxu1 }
 0x1fc   : > { %v876_v27 = vadd.f32 %v1531_v26, %v1984_v11  ;;  %v867_v28 = vpop.f32.mrb[23].mxu1  ;;  %v981_v30 = vmax.f32 %v873_v22, 0.0 }
 0x1fd   : > { %v868_v29 = vadd.f32 %v1984_v11, %v867_v28  ;;  %v979_v32 = vmax.f32 %v865_v25, 0.0 }
 0x1fe   : > { %v982_v31 = vmax.f32 %v876_v27, 0.0 }
 0x1ff   : > { %v980_v33 = vmax.f32 %v868_v29, 0.0 }
 0x200   : > { %v1407_v34 = vpack.c.bf16 %v982_v31, %v981_v30 }
 0x201   : > { %v1402_v35 = vpack.c.bf16 %v980_v33, %v979_v32 }
 0x202   : > { %1471 = vst [vmem:[%s1993_s25 + $0x18] sm:$0xff] %v1407_v34  }
 0x203   : > { %1470 = vst [vmem:[%s1993_s25 + $0x10] sm:$0xff] %v1402_v35  }
 0x209   : > { %v1534_v36 = vpop.f32.mrb[24].mxu1 }
 0x20a   : > { %v889_v37 = vadd.f32 %v1534_v36, %v1984_v11  ;;  %v880_v38 = vpop.f32.mrb[25].mxu1 }
 0x20b   : > { %v881_v39 = vadd.f32 %v1984_v11, %v880_v38  ;;  %v1535_v40 = vpop.f32.mrb[26].mxu1 }
 0x20c   : > { %v892_v42 = vadd.f32 %v1535_v40, %v1984_v11  ;;  %v883_v43 = vpop.f32.mrb[27].mxu1  ;;  %v985_v45 = vmax.f32 %v889_v37, 0.0 }
 0x20d   : > { %v884_v44 = vadd.f32 %v1984_v11, %v883_v43  ;;  %v983_v47 = vmax.f32 %v881_v39, 0.0 }
 0x20e   : > { %v986_v46 = vmax.f32 %v892_v42, 0.0 }
 0x20f   : > { %v984_v48 = vmax.f32 %v884_v44, 0.0 }
 0x210   : > { %v1417_v49 = vpack.c.bf16 %v986_v46, %v985_v45 }
 0x211   : > { %v1412_v50 = vpack.c.bf16 %v984_v48, %v983_v47 }
 0x212   : > { %1473 = vst [vmem:[%s1993_s25 + $0x28] sm:$0xff] %v1417_v49  }
 0x213   : > { %1472 = vst [vmem:[%s1993_s25 + $0x20] sm:$0xff] %v1412_v50  }
 0x219   : > { %v1538_v52 = vpop.f32.mrb[28].mxu1 }
 0x21a   : > { %v905_v53 = vadd.f32 %v1538_v52, %v1984_v11  ;;  %v896_v54 = vpop.f32.mrb[29].mxu1 }
 0x21b   : > { %v897_v55 = vadd.f32 %v1984_v11, %v896_v54  ;;  %v1539_v56 = vpop.f32.mrb[30].mxu1 }
 0x21c   : > { %v908_v57 = vadd.f32 %v1539_v56, %v1984_v11  ;;  %v899_v58 = vpop.f32.mrb[31].mxu1  ;;  %v989_v61 = vmax.f32 %v905_v53, 0.0 }
 0x21d   : > { %v900_v59 = vadd.f32 %v1984_v11, %v899_v58  ;;  %v987_v63 = vmax.f32 %v897_v55, 0.0 }
 0x21e   : > { %v990_v62 = vmax.f32 %v908_v57, 0.0 }
 0x21f   : > { %v988_v0 = vmax.f32 %v900_v59, 0.0 }
 0x220   : > { %v1427_v1 = vpack.c.bf16 %v990_v62, %v989_v61 }
 0x221   : > { %v1422_v2 = vpack.c.bf16 %v988_v0, %v987_v63 }
 0x222   : > { %1475 = vst [vmem:[%s1993_s25 + $0x38] sm:$0xff] %v1427_v1  }
 0x223   : > { %1474 = vst [vmem:[%s1993_s25 + $0x30] sm:$0xff] %v1422_v2  }
 0x229   : > { %v1542_v3 = vpop.f32.mrb[32].mxu1 }
 0x22a   : > { %v921_v4 = vadd.f32 %v1542_v3, %v1984_v11  ;;  %v912_v6 = vpop.f32.mrb[33].mxu1 }
 0x22b   : > { %v913_v7 = vadd.f32 %v1984_v11, %v912_v6  ;;  %v1543_v8 = vpop.f32.mrb[34].mxu1 }
 0x22c   : > { %v924_v9 = vadd.f32 %v1543_v8, %v1984_v11  ;;  %v915_v10 = vpop.f32.mrb[35].mxu1  ;;  %v993_v12 = vmax.f32 %v921_v4, 0.0 }
 0x22d   : > { %v916_v51 = vadd.f32 %v1984_v11, %v915_v10  ;;  %v991_v14 = vmax.f32 %v913_v7, 0.0 }
 0x22e   : > { %v994_v13 = vmax.f32 %v924_v9, 0.0 }
 0x22f   : > { %v992_v15 = vmax.f32 %v916_v51, 0.0 }
 0x230   : > { %v1437_v5 = vpack.c.bf16 %v994_v13, %v993_v12 }
 0x231   : > { %v1432_v23 = vpack.c.bf16 %v992_v15, %v991_v14 }
 0x232   : > { %1477 = vst [vmem:[%s1993_s25 + $0x48] sm:$0xff] %v1437_v5  }
 0x233   : > { %1476 = vst [vmem:[%s1993_s25 + $0x40] sm:$0xff] %v1432_v23  }
 0x239   : > { %v1546_v41 = vpop.f32.mrb[36].mxu1 }
 0x23a   : > { %v937_v60 = vadd.f32 %v1546_v41, %v1984_v11  ;;  %v928_v16 = vpop.f32.mrb[37].mxu1 }
 0x23b   : > { %v929_v17 = vadd.f32 %v1984_v11, %v928_v16  ;;  %v1547_v18 = vpop.f32.mrb[38].mxu1 }
 0x23c   : > { %v940_v19 = vadd.f32 %v1547_v18, %v1984_v11  ;;  %v931_v20 = vpop.f32.mrb[39].mxu1  ;;  %v997_v22 = vmax.f32 %v937_v60, 0.0 }
 0x23d   : > { %v932_v21 = vadd.f32 %v1984_v11, %v931_v20  ;;  %v995_v25 = vmax.f32 %v929_v17, 0.0 }
 0x23e   : > { %v998_v24 = vmax.f32 %v940_v19, 0.0 }
 0x23f   : > { %v996_v26 = vmax.f32 %v932_v21, 0.0 }
 0x240   : > { %v1447_v27 = vpack.c.bf16 %v998_v24, %v997_v22 }
 0x241   : > { %v1442_v28 = vpack.c.bf16 %v996_v26, %v995_v25  ;;  %v1550_v29 = vpop.f32.mrb[40].mxu1 }
 0x242   : > { %1479 = vst [vmem:[%s1993_s25 + $0x58] sm:$0xff] %v1447_v27   ;;  %v953_v30 = vadd.f32 %v1550_v29, %v1984_v11  ;;  %v944_v31 = vpop.f32.mrb[41].mxu1 }
 0x243   : > { %1478 = vst [vmem:[%s1993_s25 + $0x50] sm:$0xff] %v1442_v28   ;;  %v945_v32 = vadd.f32 %v1984_v11, %v944_v31  ;;  %v1551_v33 = vpop.f32.mrb[42].mxu1 }
 0x244   : > { %v956_v34 = vadd.f32 %v1551_v33, %v1984_v11  ;;  %v947_v35 = vpop.f32.mrb[43].mxu1  ;;  %v1001_v37 = vmax.f32 %v953_v30, 0.0 }
 0x245   : > { %v948_v36 = vadd.f32 %v1984_v11, %v947_v35  ;;  %v999_v39 = vmax.f32 %v945_v32, 0.0 }
 0x246   : > { %v1002_v38 = vmax.f32 %v956_v34, 0.0 }
 0x247   : > { %v1000_v40 = vmax.f32 %v948_v36, 0.0 }
 0x248   : > { %v1457_v42 = vpack.c.bf16 %v1002_v38, %v1001_v37 }
 0x249   : > { %v1452_v43 = vpack.c.bf16 %v1000_v40, %v999_v39  ;;  %v1554_v44 = vpop.f32.mrb[44].mxu1 }
 0x24a   : > { %1481 = vst [vmem:[%s1993_s25 + $0x68] sm:$0xff] %v1457_v42   ;;  %v969_v45 = vadd.f32 %v1554_v44, %v1984_v11  ;;  %v960_v46 = vpop.f32.mrb[45].mxu1 }
 0x24b   : > { %1480 = vst [vmem:[%s1993_s25 + $0x60] sm:$0xff] %v1452_v43   ;;  %v961_v47 = vadd.f32 %v1984_v11, %v960_v46  ;;  %v1555_v48 = vpop.f32.mrb[46].mxu1 }
 0x24c   : > { %v972_v49 = vadd.f32 %v1555_v48, %v1984_v11  ;;  %v963_v50 = vpop.f32.mrb[47].mxu1  ;;  %v1005_v53 = vmax.f32 %v969_v45, 0.0 }
 0x24d   : > { %v964_v52 = vadd.f32 %v1984_v11, %v963_v50  ;;  %v1003_v55 = vmax.f32 %v961_v47, 0.0 }
 0x24e   : > { %v1006_v54 = vmax.f32 %v972_v49, 0.0 }
 0x24f   : > { %v1004_v56 = vmax.f32 %v964_v52, 0.0 }
 0x250   : > { %v1467_v57 = vpack.c.bf16 %v1006_v54, %v1005_v53 }
 0x251   : > { %v1462_v58 = vpack.c.bf16 %v1004_v56, %v1003_v55 }
 0x252   : > { %1483 = vst [vmem:[%s1993_s25 + $0x78] sm:$0xff] %v1467_v57  }
 0x253   : > { %1482 = vst [vmem:[%s1993_s25 + $0x70] sm:$0xff] %v1462_v58  }
 0x254   : > { %1694 = shalt.err (!%p1691_p3)
}
 0x255   : > { %s1695_s15 = scalar_lea.hbm %s2042_s8, 2048  ;;  %s1699_s16 = scalar_lea.hbm %s2096_s5, 8192 }
 0x256   : > { %p1696_p4 = scmp.ne.s32.totalorder %s2042_s8, %s1695_s15  ;;  %p1700_p9 = scmp.lt.u32.totalorder %s2042_s8, %s2096_s5 }
 0x257   : > { %p1701_p10 = scmp.lt.u32.totalorder %s1699_s16, %s1695_s15  ;;  %p1703_p12 = scmp.lt.u32.totalorder %s1695_s15, %s2042_s8 }
 0x258   : > { %p1697_p7 = pnand %p1696_p4, %p1817_p5 }
 0x259   : > { %p1702_p11 = por %p1701_p10, %p1700_p9 }
 0x25a   : > { %p1698_p8 = pneg %p1697_p7 }
 0x25b   : > { %p1704_p13 = por %p1703_p12, %p1702_p11 }
 0x25d   : > { %p1705_p0 = pnand %p1704_p13, %p1698_p8 }
 0x25f   : > { %1708 = shalt.err (!%p1705_p0)
}
 0x260   : > { %s1747_s25 = smov 64   ;;  %s1748_s26 = smov 4  }
 0x261   : > { %1574 = dma.vmem_to_hbm [thread:$0]  (%p1817_p5), %s2044_s30, 2048, %s2042_s8, %s2050_s22, %s1747_s25, %s1747_s25, %s1748_s26  }
 0x262 PF: > { %p1580_p1 = scmp.ge.s32.totalorder %s1743_s21, 2  ;;  %s1196_s6 = sand.u32 1, %s1731_s18  }
 0x263   : > { %s1197_s7 = scalar_lea.sflag [#allocation3], %s1196_s6 }
 0x264   : > { %p1577_p2 = pnand %p1580_p1, %p1821_p6 }
 0x266   : > { %1726 = dma.done.wait (!%p1577_p2), %s1197_s7, 2048  }
 0x267   : > { %1728 = vsyncadd (!%p1577_p2), %s1197_s7, 4294965248  ;;  %p15_p3 = scmp.ge.s32.totalorder %s1804_s24, 6   ;;  %s2099_s18 = smov %s1735_s19 }
 0x268   : > { %s2100_s19 = smov %s1739_s20  ;;  %s2101_s20 = smov %s1815_s27 }
 0x269   : > { %s2102_s21 = smov %s1804_s24  ;;  %17 = sbr.rel (!%p15_p3) target bundleno = 3 (0x3), region = 75 }
 0x270   :  { %1202 = vsyncpa [#allocation3], 1 }
 0x271   :  { %1204 = vsyncpa [#allocation3 + $0x1], 1 }

</bundles_post_ra>
